<compile_context>
chip_gen: v5e
topology: v5e:2x2
jax: 0.10.0
libtpu: 0.0.40
codegen_flags: <defaults>
</compile_context>

<pallas_src>
import math
from functools import partial

import jax
import jax.numpy as jnp
from jax import lax
from jax.experimental import pallas as pl
from jax.experimental.pallas import tpu as pltpu


# ---------------------------------------------------------------------------
# Tiling / VMEM planning helpers
# ---------------------------------------------------------------------------

def _round_up(x, m):
    return ((x + m - 1) // m) * m


def _vmem_cap_bytes():
    """Physical VMEM per TensorCore (64 MiB on v7x, 128 MiB on v5e/v6e)."""
    try:
        return int(pltpu.get_tpu_info().vmem_capacity_bytes)
    except Exception:
        return 64 * 2**20          # conservative (v7x-class) fallback


def _q_tile_cap(embed_dim):
    """Generation-aware row/query-tile cap: bigger tiles amortize the ~0.35 us
    per-grid-step overhead, but v7x only has 64 MiB of VMEM."""
    if _vmem_cap_bytes() <= 64 * 2**20:            # v7x-class
        return 128 if embed_dim >= 2048 else 256
    return 512                                      # v5e / v6e


def _seq_tile(length, cap):
    """Largest tile <= cap that divides `length` and is (8,128)-legal."""
    if length <= cap:
        return length              # block == full dim is always legal
    t = cap
    while t >= 128:
        if length % t == 0 and t % 8 == 0:
            return t
        t //= 2
    return length                  # fallback: no tiling


def _k_tile(D):
    """Contraction tile for the projection matmul (lane-legal: 128-mult or == D)."""
    if D <= 512:
        return D
    for t in (512, 256, 128):
        if D % t == 0:
            return t
    return D


def _tile_bytes(shape, dtype):
    """VMEM bytes of one buffer of `shape`, padded to the (sublane, 128) layout."""
    itemsize = jnp.dtype(dtype).itemsize
    dims = list(shape)
    if dims:
        dims[-1] = _round_up(dims[-1], 128)
    if len(dims) >= 2:
        dims[-2] = _round_up(dims[-2], 8 * max(1, 4 // itemsize))
    n = 1
    for s in dims:
        n *= s
    return n * itemsize


def _vmem_limit(needed_bytes):
    """vmem_limit_bytes: 2x the computed plan, floored at 32 MiB, and capped
    below the physical per-core VMEM so the compiler keeps headroom."""
    cap = _vmem_cap_bytes()
    return int(min(max(2 * needed_bytes, 32 * 2**20), int(cap * 0.75)))


# ---------------------------------------------------------------------------
# Kernel 1: tiled projection  y = (x @ W + b) * scale  ->  head-major bf16
# ---------------------------------------------------------------------------

def _proj_kernel(x_ref, w_ref, b_ref, o_ref, acc_ref, *, n_heads, head_dim, scale):
    """Grid = (batch, row_tile, k_tile).

    x_ref  : (TM, TK) f32   (batch dim squeezed; cast to bf16 in-kernel)
    w_ref  : (TK, D)  bf16
    b_ref  : (1, D)   f32
    o_ref  : (H, TM, d) bf16   head-major output tile
    acc_ref: (TM, D)  f32   accumulator carried across the k axis
    """
    k = pl.program_id(2)

    @pl.when(k == 0)
    def _init():
        acc_ref[...] = jnp.zeros_like(acc_ref)

    x = x_ref[...].astype(jnp.bfloat16)          # in-kernel cast: no HBM convert pass
    acc_ref[...] += jnp.dot(x, w_ref[...], preferred_element_type=jnp.float32)

    @pl.when(k == pl.num_programs(2) - 1)
    def _finalize():
        y = acc_ref[...] + b_ref[0]
        if scale != 1.0:                          # fold 1/sqrt(d) into the Q projection
            y = y * scale
        y = y.astype(o_ref.dtype)
        # The per-head lane-offset slice happens exactly once here (head-major
        # layout); the attention kernel then only sees lane-0-aligned operands.
        for h in range(n_heads):
            o_ref[h] = y[:, h * head_dim:(h + 1) * head_dim]


def _project_head_major(x, w_bf16, b_f32, *, n_heads, scale):
    """x: (B, L, D) f32, w: (D, D) bf16, b: (1, D) f32 -> (B, H, L, d) bf16."""
    B, L, D = x.shape
    assert D % n_heads == 0
    head_dim = D // n_heads

    TM = _seq_tile(L, _q_tile_cap(D))
    TK = _k_tile(D)
    grid = (B, L // TM, D // TK)

    x_spec = pl.BlockSpec((None, TM, TK), lambda b, i, k: (b, i, k))
    w_spec = pl.BlockSpec((TK, D), lambda b, i, k: (k, 0))
    # TODO(synk): bias block index is constant; pipeline_mode=pl.Buffered(1) would
    #             drop its (tiny) redundant second buffer.
    b_spec = pl.BlockSpec((1, D), lambda b, i, k: (0, 0))
    o_spec = pl.BlockSpec((None, n_heads, TM, head_dim), lambda b, i, k: (b, 0, i, 0))

    needed = (2 * (_tile_bytes((TM, TK), jnp.float32)
                   + _tile_bytes((TK, D), jnp.bfloat16)
                   + _tile_bytes((1, D), jnp.float32)
                   + _tile_bytes((n_heads, TM, head_dim), jnp.bfloat16))
              + _tile_bytes((TM, D), jnp.float32))

    cost = pl.CostEstimate(
        flops=int(2 * B * L * D * D),
        transcendentals=0,
        bytes_accessed=int(B * L * D * 4              # f32 activations in
                           + B * (L // TM) * D * D * 2  # bf16 weights re-streamed per row tile
                           + B * L * D * 2))          # bf16 head-major out

    kernel = partial(_proj_kernel, n_heads=n_heads, head_dim=head_dim, scale=scale)

    return pl.pallas_call(
        kernel,
        out_shape=jax.ShapeDtypeStruct((B, n_heads, L, head_dim), jnp.bfloat16),
        grid_spec=pltpu.PrefetchScalarGridSpec(
            num_scalar_prefetch=0,
            grid=grid,
            in_specs=[x_spec, w_spec, b_spec],
            out_specs=o_spec,
            scratch_shapes=[pltpu.VMEM((TM, D), jnp.float32)]),
        compiler_params=pltpu.CompilerParams(
            dimension_semantics=("parallel", "parallel", "arbitrary"),
            vmem_limit_bytes=_vmem_limit(needed)),
        cost_estimate=cost,
    )(x, w_bf16, b_f32)


# ---------------------------------------------------------------------------
# Kernel 2: flash attention over head-major pre-projected operands
# ---------------------------------------------------------------------------

def _flash_attn_kernel(q_ref, k_ref, v_ref, o_ref, m_ref, l_ref, acc_ref):
    """Grid = (batch, head, q_tile, kv_tile).

    q_ref       : (TQ, d)  bf16   (scale already folded in)
    k_ref, v_ref: (TKV, d) bf16
    o_ref       : (TQ, d)  f32
    m_ref, l_ref: (TQ, 1)  f32    running max / denom (carried over kv axis)
    acc_ref     : (TQ, d)  f32    output accumulator (carried over kv axis)
    """
    j = pl.program_id(3)

    @pl.when(j == 0)
    def _init():
        m_ref[...] = jnp.full_like(m_ref, -jnp.inf)
        l_ref[...] = jnp.zeros_like(l_ref)
        acc_ref[...] = jnp.zeros_like(acc_ref)

    # QK^T without materializing a transpose: contract head_dim of both operands.
    s = lax.dot_general(q_ref[...], k_ref[...],
                        dimension_numbers=(((1,), (1,)), ((), ())),
                        preferred_element_type=jnp.float32)        # (TQ, TKV) f32

    m_prev = m_ref[...]
    m_new = jnp.maximum(m_prev, jnp.max(s, axis=-1, keepdims=True))
    alpha = jnp.exp(m_prev - m_new)
    p = jnp.exp(s - m_new)                                          # f32 (v5e-safe)
    l_ref[...] = alpha * l_ref[...] + jnp.sum(p, axis=-1, keepdims=True)
    acc_ref[...] = alpha * acc_ref[...] + jnp.dot(
        p.astype(v_ref.dtype), v_ref[...], preferred_element_type=jnp.float32)
    m_ref[...] = m_new

    @pl.when(j == pl.num_programs(3) - 1)
    def _finalize():
        # Exact reciprocal: only TQ values per head -> essentially free, tighter
        # accuracy than the approx EUP reciprocal.
        o_ref[...] = (acc_ref[...] / l_ref[...]).astype(o_ref.dtype)


def _flash_attention(qp, kp, vp):
    """qp/kp/vp: (B, H, L, d) bf16 -> (B, H, L, d) f32."""
    B, H, L, d = qp.shape

    TQ = _seq_tile(L, _q_tile_cap(H * d))
    TKV = _seq_tile(L, 256)
    grid = (B, H, L // TQ, L // TKV)

    q_spec = pl.BlockSpec((None, None, TQ, d), lambda b, h, i, j: (b, h, i, 0))
    kv_spec = pl.BlockSpec((None, None, TKV, d), lambda b, h, i, j: (b, h, j, 0))
    o_spec = pl.BlockSpec((None, None, TQ, d), lambda b, h, i, j: (b, h, i, 0))

    needed = (2 * (_tile_bytes((TQ, d), jnp.bfloat16)
                   + 2 * _tile_bytes((TKV, d), jnp.bfloat16)
                   + _tile_bytes((TQ, d), jnp.float32))
              + 2 * _tile_bytes((TQ, 1), jnp.float32)
              + _tile_bytes((TQ, d), jnp.float32))

    cost = pl.CostEstimate(
        flops=int(4 * B * H * L * L * d),
        transcendentals=int(B * H * L * L),
        bytes_accessed=int(B * H * L * d * 2                       # q
                           + 2 * B * H * (L // TQ) * L * d * 2     # k, v re-streamed per q tile
                           + B * H * L * d * 4))                   # f32 out

    return pl.pallas_call(
        _flash_attn_kernel,
        out_shape=jax.ShapeDtypeStruct((B, H, L, d), jnp.float32),
        grid_spec=pltpu.PrefetchScalarGridSpec(
            num_scalar_prefetch=0,
            grid=grid,
            in_specs=[q_spec, kv_spec, kv_spec],
            out_specs=o_spec,
            scratch_shapes=[
                pltpu.VMEM((TQ, 1), jnp.float32),    # running max
                pltpu.VMEM((TQ, 1), jnp.float32),    # running denom
                pltpu.VMEM((TQ, d), jnp.float32),    # output accumulator
            ]),
        compiler_params=pltpu.CompilerParams(
            dimension_semantics=("parallel", "parallel", "parallel", "arbitrary"),
            vmem_limit_bytes=_vmem_limit(needed)),
        cost_estimate=cost,
    )(qp, kp, vp)


# ---------------------------------------------------------------------------
# Module wrapper
# ---------------------------------------------------------------------------

def prepare_params(params):
    """One-time parameter prep (do NOT call per step): bf16 MXU weights,
    f32 (1, D) biases. Avoids a standalone HBM->HBM weight cast pass per call."""
    D = params["wq"].shape[0]
    return {
        "wq": params["wq"].astype(jnp.bfloat16),
        "wk": params["wk"].astype(jnp.bfloat16),
        "wv": params["wv"].astype(jnp.bfloat16),
        "bq": params["bq"].reshape(1, D).astype(jnp.float32),
        "bk": params["bk"].reshape(1, D).astype(jnp.float32),
        "bv": params["bv"].reshape(1, D).astype(jnp.float32),
    }


def encoder_self_attention(q, k, v, params, *, n_heads):
    """q, k, v: (B, L, D) f32.  params: output of prepare_params.  Returns (B, L, D) f32."""
    B, L, D = q.shape
    assert D % n_heads == 0
    head_dim = D // n_heads
    scale = 1.0 / math.sqrt(head_dim)

    # 1) Hoisted projections (1/sqrt(d) folded into Q); head-major bf16 outputs.
    qp = _project_head_major(q, params["wq"], params["bq"], n_heads=n_heads, scale=scale)
    kp = _project_head_major(k, params["wk"], params["bk"], n_heads=n_heads, scale=1.0)
    vp = _project_head_major(v, params["wv"], params["bv"], n_heads=n_heads, scale=1.0)

    # 2) Flash attention over (B, H, L, d).
    out_hm = _flash_attention(qp, kp, vp)                  # (B, H, L, d) f32

    # 3) Back to (B, L, D) for the module's output layout.
    # TODO(synk): when head_dim is a multiple of 128 this transpose can be folded
    #             into the attention kernel via direct o_ref[:, lo:hi] stores.
    return jnp.transpose(out_hm, (0, 2, 1, 3)).reshape(B, L, D)


def _reference(q, k, v, params, *, n_heads):
    """Plain-JAX f32 reference mirroring the PyTorch forward (eval mode)."""
    B, L, D = q.shape
    d = D // n_heads
    qp = q @ params["wq"] + params["bq"]
    kp = k @ params["wk"] + params["bk"]
    vp = v @ params["wv"] + params["bv"]

    def split(x):  # (B, L, D) -> (B, H, L, d)
        return x.reshape(B, L, n_heads, d).transpose(0, 2, 1, 3)

    qh, kh, vh = split(qp), split(kp), split(vp)
    scores = jnp.einsum("bhqd,bhkd->bhqk", qh, kh) / math.sqrt(d)
    p = jax.nn.softmax(scores, axis=-1)
    out = jnp.einsum("bhqk,bhkd->bhqd", p, vh)
    return out.transpose(0, 2, 1, 3).reshape(B, L, D)


if __name__ == "__main__":
    # Small shapes consistent with the module: B=2, L=8, D=32, H=4 (d=8).
    B, L, D, H = 2, 8, 32, 4

    key = jax.random.PRNGKey(0)
    ks = jax.random.split(key, 9)
    q = jax.random.normal(ks[0], (B, L, D), jnp.float32)
    k = jax.random.normal(ks[1], (B, L, D), jnp.float32)
    v = jax.random.normal(ks[2], (B, L, D), jnp.float32)

    # Deterministic parameter init (nn.Linear(embed_dim, embed_dim) x3).
    s = 1.0 / math.sqrt(D)
    params = {
        "wq": jax.random.uniform(ks[3], (D, D), jnp.float32, -s, s),
        "bq": jax.random.uniform(ks[4], (D,),   jnp.float32, -s, s),
        "wk": jax.random.uniform(ks[5], (D, D), jnp.float32, -s, s),
        "bk": jax.random.uniform(ks[6], (D,),   jnp.float32, -s, s),
        "wv": jax.random.uniform(ks[7], (D, D), jnp.float32, -s, s),
        "bv": jax.random.uniform(ks[8], (D,),   jnp.float32, -s, s),
    }

    prepped = prepare_params(params)            # one-time bf16 weight cast
    attn_fn = jax.jit(partial(encoder_self_attention, n_heads=H))

    out = attn_fn(q, k, v, prepped)
    out = jax.block_until_ready(out)

    ref = _reference(q, k, v, params, n_heads=H)
    assert out.shape == (B, L, D)
    # bf16 MXU operands + bf16 projected intermediates -> loosened tolerance vs pure-f32 ref.
    assert jnp.allclose(out, ref, atol=5e-2, rtol=5e-2), "mismatch vs reference"

    print("KERNEL_OK")
</pallas_src>

<mosaic_0001>
module attributes {stable_mosaic.version = 11 : i64} {
  func.func @_proj_kernel(%arg0: i32, %arg1: i32, %arg2: i32, %arg3: memref<1x8x32xf32, #tpu.memory_space<vmem>>, %arg4: memref<32x32xbf16, #tpu.memory_space<vmem>>, %arg5: memref<1x32xf32, #tpu.memory_space<vmem>>, %arg6: memref<1x4x8x8xbf16, #tpu.memory_space<vmem>>, %arg7: memref<8x32xf32, #tpu.memory_space<vmem>>) attributes {dimension_semantics = [#tpu.dimension_semantics<parallel>, #tpu.dimension_semantics<parallel>, #tpu.dimension_semantics<arbitrary>], iteration_bounds = array<i64: 2, 1, 1>, scalar_prefetch = 0 : i64, scratch_operands = 1 : i64, tpu.core_type = #tpu.core_type<tc>, window_params = [{transform_indices = @transform_0, window_bounds = array<i64: 1, 8, 32>}, {transform_indices = @transform_1, window_bounds = array<i64: 32, 32>}, {pipeline_mode = #tpu.pipeline_mode<synchronous>, transform_indices = @transform_2, window_bounds = array<i64: 1, 32>}, {transform_indices = @transform_3, window_bounds = array<i64: 1, 4, 8, 8>}]} {
    %c0_i32 = arith.constant 0 : i32
    %0 = arith.cmpi eq, %arg2, %c0_i32 : i32
    %1 = arith.extui %0 : i1 to i32
    %c0_i32_0 = arith.constant 0 : i32
    %2 = arith.cmpi ne, %1, %c0_i32_0 : i32
    scf.if %2 {
      %cst_11 = arith.constant 0.000000e+00 : f32
      %14 = vector.broadcast %cst_11 : f32 to vector<8x32xf32>
      %c0_12 = arith.constant 0 : index
      %c0_13 = arith.constant 0 : index
      %15 = vector.load %arg7[%c0_12, %c0_13] : memref<8x32xf32, #tpu.memory_space<vmem>>, vector<8x32xf32>
      tpu.vector_store %arg7[%c0_12, %c0_13], %14 {strides = array<i32>} : memref<8x32xf32, #tpu.memory_space<vmem>>, vector<8x32xf32>,
    } else {
    }
    %c0 = arith.constant 0 : index
    %c0_1 = arith.constant 0 : index
    %c0_2 = arith.constant 0 : index
    %3 = vector.load %arg3[%c0, %c0_1, %c0_2] : memref<1x8x32xf32, #tpu.memory_space<vmem>>, vector<1x8x32xf32>
    %4 = vector.shape_cast %3 : vector<1x8x32xf32> to vector<8x32xf32>
    %5 = arith.truncf %4 : vector<8x32xf32> to vector<8x32xbf16>
    %c0_3 = arith.constant 0 : index
    %c0_4 = arith.constant 0 : index
    %6 = vector.load %arg7[%c0_3, %c0_4] : memref<8x32xf32, #tpu.memory_space<vmem>>, vector<8x32xf32>
    %c0_5 = arith.constant 0 : index
    %c0_6 = arith.constant 0 : index
    %7 = vector.load %arg4[%c0_5, %c0_6] : memref<32x32xbf16, #tpu.memory_space<vmem>>, vector<32x32xbf16>
    %cst = arith.constant dense<0.000000e+00> : vector<8x32xf32>
    %8 = tpu.matmul %5, %7, %cst {dimension_numbers = #tpu.dot_dimension_numbers<[1], [0], [0], [1], [0, 0, 1, 1], [], []>} : vector<8x32xbf16>, vector<32x32xbf16>, vector<8x32xf32> -> vector<8x32xf32>
    %9 = arith.addf %6, %8 : vector<8x32xf32>
    %c0_7 = arith.constant 0 : index
    %c0_8 = arith.constant 0 : index
    %10 = vector.load %arg7[%c0_7, %c0_8] : memref<8x32xf32, #tpu.memory_space<vmem>>, vector<8x32xf32>
    tpu.vector_store %arg7[%c0_7, %c0_8], %9 {strides = array<i32>} : memref<8x32xf32, #tpu.memory_space<vmem>>, vector<8x32xf32>,
    %c0_i32_9 = arith.constant 0 : i32
    %11 = arith.cmpi eq, %arg2, %c0_i32_9 : i32
    %12 = arith.extui %11 : i1 to i32
    %c0_i32_10 = arith.constant 0 : i32
    %13 = arith.cmpi ne, %12, %c0_i32_10 : i32
    scf.if %13 {
      %c0_11 = arith.constant 0 : index
      %c0_12 = arith.constant 0 : index
      %14 = vector.load %arg7[%c0_11, %c0_12] : memref<8x32xf32, #tpu.memory_space<vmem>>, vector<8x32xf32>
      %c0_13 = arith.constant 0 : index
      %c0_14 = arith.constant 0 : index
      %15 = vector.load %arg5[%c0_13, %c0_14] : memref<1x32xf32, #tpu.memory_space<vmem>>, vector<1x32xf32>
      %16 = vector.shape_cast %15 : vector<1x32xf32> to vector<32xf32>
      %17 = vector.shape_cast %16 : vector<32xf32> to vector<1x32xf32>
      %18 = vector.broadcast %17 : vector<1x32xf32> to vector<8x32xf32>
      %19 = arith.addf %14, %18 : vector<8x32xf32>
      %20 = arith.truncf %19 : vector<8x32xf32> to vector<8x32xbf16>
      %21 = vector.extract_strided_slice %20 {offsets = [0, 0], sizes = [8, 8], strides = [1, 1]} : vector<8x32xbf16> to vector<8x8xbf16>
      %c0_15 = arith.constant 0 : index
      %c0_16 = arith.constant 0 : index
      %c0_17 = arith.constant 0 : index
      %c0_18 = arith.constant 0 : index
      %22 = vector.load %arg6[%c0_15, %c0_16, %c0_17, %c0_18] : memref<1x4x8x8xbf16, #tpu.memory_space<vmem>>, vector<1x1x8x8xbf16>
      %23 = vector.shape_cast %22 : vector<1x1x8x8xbf16> to vector<8x8xbf16>
      %24 = vector.shape_cast %21 : vector<8x8xbf16> to vector<1x1x8x8xbf16>
      tpu.vector_store %arg6[%c0_15, %c0_16, %c0_17, %c0_18], %24 {strides = array<i32>} : memref<1x4x8x8xbf16, #tpu.memory_space<vmem>>, vector<1x1x8x8xbf16>,
      %25 = vector.extract_strided_slice %20 {offsets = [0, 8], sizes = [8, 8], strides = [1, 1]} : vector<8x32xbf16> to vector<8x8xbf16>
      %c0_19 = arith.constant 0 : index
      %c1 = arith.constant 1 : index
      %c0_20 = arith.constant 0 : index
      %c0_21 = arith.constant 0 : index
      %26 = vector.load %arg6[%c0_19, %c1, %c0_20, %c0_21] : memref<1x4x8x8xbf16, #tpu.memory_space<vmem>>, vector<1x1x8x8xbf16>
      %27 = vector.shape_cast %26 : vector<1x1x8x8xbf16> to vector<8x8xbf16>
      %28 = vector.shape_cast %25 : vector<8x8xbf16> to vector<1x1x8x8xbf16>
      tpu.vector_store %arg6[%c0_19, %c1, %c0_20, %c0_21], %28 {strides = array<i32>} : memref<1x4x8x8xbf16, #tpu.memory_space<vmem>>, vector<1x1x8x8xbf16>,
      %29 = vector.extract_strided_slice %20 {offsets = [0, 16], sizes = [8, 8], strides = [1, 1]} : vector<8x32xbf16> to vector<8x8xbf16>
      %c0_22 = arith.constant 0 : index
      %c2 = arith.constant 2 : index
      %c0_23 = arith.constant 0 : index
      %c0_24 = arith.constant 0 : index
      %30 = vector.load %arg6[%c0_22, %c2, %c0_23, %c0_24] : memref<1x4x8x8xbf16, #tpu.memory_space<vmem>>, vector<1x1x8x8xbf16>
      %31 = vector.shape_cast %30 : vector<1x1x8x8xbf16> to vector<8x8xbf16>
      %32 = vector.shape_cast %29 : vector<8x8xbf16> to vector<1x1x8x8xbf16>
      tpu.vector_store %arg6[%c0_22, %c2, %c0_23, %c0_24], %32 {strides = array<i32>} : memref<1x4x8x8xbf16, #tpu.memory_space<vmem>>, vector<1x1x8x8xbf16>,
      %33 = vector.extract_strided_slice %20 {offsets = [0, 24], sizes = [8, 8], strides = [1, 1]} : vector<8x32xbf16> to vector<8x8xbf16>
      %c0_25 = arith.constant 0 : index
      %c3 = arith.constant 3 : index
      %c0_26 = arith.constant 0 : index
      %c0_27 = arith.constant 0 : index
      %34 = vector.load %arg6[%c0_25, %c3, %c0_26, %c0_27] : memref<1x4x8x8xbf16, #tpu.memory_space<vmem>>, vector<1x1x8x8xbf16>
      %35 = vector.shape_cast %34 : vector<1x1x8x8xbf16> to vector<8x8xbf16>
      %36 = vector.shape_cast %33 : vector<8x8xbf16> to vector<1x1x8x8xbf16>
      tpu.vector_store %arg6[%c0_25, %c3, %c0_26, %c0_27], %36 {strides = array<i32>} : memref<1x4x8x8xbf16, #tpu.memory_space<vmem>>, vector<1x1x8x8xbf16>,
    } else {
    }
    return
  }
  func.func @transform_0(%arg0: i32, %arg1: i32, %arg2: i32) -> (i32, i32, i32) {
    %c0_i32 = arith.constant 0 : i32
    return %arg0, %arg1, %arg2 : i32, i32, i32
  }
  func.func @transform_1(%arg0: i32, %arg1: i32, %arg2: i32) -> (i32, i32) {
    %c0_i32 = arith.constant 0 : i32
    %c0_i32_0 = arith.constant 0 : i32
    return %arg2, %c0_i32 : i32, i32
  }
  func.func @transform_2(%arg0: i32, %arg1: i32, %arg2: i32) -> (i32, i32) {
    %c0_i32 = arith.constant 0 : i32
    %c0_i32_0 = arith.constant 0 : i32
    %c0_i32_1 = arith.constant 0 : i32
    return %c0_i32, %c0_i32_0 : i32, i32
  }
  func.func @transform_3(%arg0: i32, %arg1: i32, %arg2: i32) -> (i32, i32, i32, i32) {
    %c0_i32 = arith.constant 0 : i32
    %c0_i32_0 = arith.constant 0 : i32
    %c0_i32_1 = arith.constant 0 : i32
    return %arg0, %c0_i32, %arg1, %c0_i32_0 : i32, i32, i32, i32
  }
}

module attributes {stable_mosaic.version = 11 : i64} {
  func.func @_flash_attn_kernel(%arg0: i32, %arg1: i32, %arg2: i32, %arg3: i32, %arg4: memref<1x1x8x8xbf16, #tpu.memory_space<vmem>>, %arg5: memref<1x1x8x8xbf16, #tpu.memory_space<vmem>>, %arg6: memref<1x1x8x8xbf16, #tpu.memory_space<vmem>>, %arg7: memref<1x1x8x8xf32, #tpu.memory_space<vmem>>, %arg8: memref<8x1xf32, #tpu.memory_space<vmem>>, %arg9: memref<8x1xf32, #tpu.memory_space<vmem>>, %arg10: memref<8x8xf32, #tpu.memory_space<vmem>>) attributes {dimension_semantics = [#tpu.dimension_semantics<parallel>, #tpu.dimension_semantics<parallel>, #tpu.dimension_semantics<parallel>, #tpu.dimension_semantics<arbitrary>], iteration_bounds = array<i64: 2, 4, 1, 1>, scalar_prefetch = 0 : i64, scratch_operands = 3 : i64, tpu.core_type = #tpu.core_type<tc>, window_params = [{transform_indices = @transform_0, window_bounds = array<i64: 1, 1, 8, 8>}, {transform_indices = @transform_1, window_bounds = array<i64: 1, 1, 8, 8>}, {transform_indices = @transform_2, window_bounds = array<i64: 1, 1, 8, 8>}, {transform_indices = @transform_3, window_bounds = array<i64: 1, 1, 8, 8>}]} {
    %c0_i32 = arith.constant 0 : i32
    %0 = arith.cmpi eq, %arg3, %c0_i32 : i32
    %1 = arith.extui %0 : i1 to i32
    %c0_i32_0 = arith.constant 0 : i32
    %2 = arith.cmpi ne, %1, %c0_i32_0 : i32
    scf.if %2 {
      %cst_29 = arith.constant 0xFF800000 : f32
      %36 = vector.broadcast %cst_29 : f32 to vector<8x1xf32>
      %c0_30 = arith.constant 0 : index
      %c0_31 = arith.constant 0 : index
      %37 = vector.load %arg8[%c0_30, %c0_31] : memref<8x1xf32, #tpu.memory_space<vmem>>, vector<8x1xf32>
      tpu.vector_store %arg8[%c0_30, %c0_31], %36 {strides = array<i32>} : memref<8x1xf32, #tpu.memory_space<vmem>>, vector<8x1xf32>,
      %cst_32 = arith.constant 0.000000e+00 : f32
      %38 = vector.broadcast %cst_32 : f32 to vector<8x1xf32>
      %c0_33 = arith.constant 0 : index
      %c0_34 = arith.constant 0 : index
      %39 = vector.load %arg9[%c0_33, %c0_34] : memref<8x1xf32, #tpu.memory_space<vmem>>, vector<8x1xf32>
      tpu.vector_store %arg9[%c0_33, %c0_34], %38 {strides = array<i32>} : memref<8x1xf32, #tpu.memory_space<vmem>>, vector<8x1xf32>,
      %cst_35 = arith.constant 0.000000e+00 : f32
      %40 = vector.broadcast %cst_35 : f32 to vector<8x8xf32>
      %c0_36 = arith.constant 0 : index
      %c0_37 = arith.constant 0 : index
      %41 = vector.load %arg10[%c0_36, %c0_37] : memref<8x8xf32, #tpu.memory_space<vmem>>, vector<8x8xf32>
      tpu.vector_store %arg10[%c0_36, %c0_37], %40 {strides = array<i32>} : memref<8x8xf32, #tpu.memory_space<vmem>>, vector<8x8xf32>,
    } else {
    }
    %c0 = arith.constant 0 : index
    %c0_1 = arith.constant 0 : index
    %c0_2 = arith.constant 0 : index
    %c0_3 = arith.constant 0 : index
    %3 = vector.load %arg4[%c0, %c0_1, %c0_2, %c0_3] : memref<1x1x8x8xbf16, #tpu.memory_space<vmem>>, vector<1x1x8x8xbf16>
    %4 = vector.shape_cast %3 : vector<1x1x8x8xbf16> to vector<8x8xbf16>
    %c0_4 = arith.constant 0 : index
    %c0_5 = arith.constant 0 : index
    %c0_6 = arith.constant 0 : index
    %c0_7 = arith.constant 0 : index
    %5 = vector.load %arg5[%c0_4, %c0_5, %c0_6, %c0_7] : memref<1x1x8x8xbf16, #tpu.memory_space<vmem>>, vector<1x1x8x8xbf16>
    %6 = vector.shape_cast %5 : vector<1x1x8x8xbf16> to vector<8x8xbf16>
    %cst = arith.constant dense<0.000000e+00> : vector<8x8xf32>
    %7 = tpu.matmul %4, %6, %cst {dimension_numbers = #tpu.dot_dimension_numbers<[1], [1], [0], [0], [0, 0, 1, 0], [], []>} : vector<8x8xbf16>, vector<8x8xbf16>, vector<8x8xf32> -> vector<8x8xf32>
    %c0_8 = arith.constant 0 : index
    %c0_9 = arith.constant 0 : index
    %8 = vector.load %arg8[%c0_8, %c0_9] : memref<8x1xf32, #tpu.memory_space<vmem>>, vector<8x1xf32>
    %cst_10 = arith.constant dense<0xFF800000> : vector<8xf32>
    %9 = vector.multi_reduction <maximumf>, %7, %cst_10 [1] : vector<8x8xf32> to vector<8xf32>
    %10 = vector.shape_cast %9 : vector<8xf32> to vector<8x1xf32>
    %11 = arith.maximumf %8, %10 : vector<8x1xf32>
    %12 = arith.subf %8, %11 : vector<8x1xf32>
    %13 = math.exp %12 : vector<8x1xf32>
    %14 = vector.broadcast %11 : vector<8x1xf32> to vector<8x8xf32>
    %15 = arith.subf %7, %14 : vector<8x8xf32>
    %16 = math.exp %15 : vector<8x8xf32>
    %c0_11 = arith.constant 0 : index
    %c0_12 = arith.constant 0 : index
    %17 = vector.load %arg9[%c0_11, %c0_12] : memref<8x1xf32, #tpu.memory_space<vmem>>, vector<8x1xf32>
    %18 = arith.mulf %13, %17 : vector<8x1xf32>
    %cst_13 = arith.constant dense<0.000000e+00> : vector<8xf32>
    %19 = vector.multi_reduction <add>, %16, %cst_13 [1] : vector<8x8xf32> to vector<8xf32>
    %20 = vector.shape_cast %19 : vector<8xf32> to vector<8x1xf32>
    %21 = arith.addf %18, %20 : vector<8x1xf32>
    %c0_14 = arith.constant 0 : index
    %c0_15 = arith.constant 0 : index
    %22 = vector.load %arg9[%c0_14, %c0_15] : memref<8x1xf32, #tpu.memory_space<vmem>>, vector<8x1xf32>
    tpu.vector_store %arg9[%c0_14, %c0_15], %21 {strides = array<i32>} : memref<8x1xf32, #tpu.memory_space<vmem>>, vector<8x1xf32>,
    %c0_16 = arith.constant 0 : index
    %c0_17 = arith.constant 0 : index
    %23 = vector.load %arg10[%c0_16, %c0_17] : memref<8x8xf32, #tpu.memory_space<vmem>>, vector<8x8xf32>
    %24 = vector.broadcast %13 : vector<8x1xf32> to vector<8x8xf32>
    %25 = arith.mulf %24, %23 : vector<8x8xf32>
    %26 = arith.truncf %16 : vector<8x8xf32> to vector<8x8xbf16>
    %c0_18 = arith.constant 0 : index
    %c0_19 = arith.constant 0 : index
    %c0_20 = arith.constant 0 : index
    %c0_21 = arith.constant 0 : index
    %27 = vector.load %arg6[%c0_18, %c0_19, %c0_20, %c0_21] : memref<1x1x8x8xbf16, #tpu.memory_space<vmem>>, vector<1x1x8x8xbf16>
    %28 = vector.shape_cast %27 : vector<1x1x8x8xbf16> to vector<8x8xbf16>
    %cst_22 = arith.constant dense<0.000000e+00> : vector<8x8xf32>
    %29 = tpu.matmul %26, %28, %cst_22 {dimension_numbers = #tpu.dot_dimension_numbers<[1], [0], [0], [1], [0, 0, 1, 1], [], []>} : vector<8x8xbf16>, vector<8x8xbf16>, vector<8x8xf32> -> vector<8x8xf32>
    %30 = arith.addf %25, %29 : vector<8x8xf32>
    %c0_23 = arith.constant 0 : index
    %c0_24 = arith.constant 0 : index
    %31 = vector.load %arg10[%c0_23, %c0_24] : memref<8x8xf32, #tpu.memory_space<vmem>>, vector<8x8xf32>
    tpu.vector_store %arg10[%c0_23, %c0_24], %30 {strides = array<i32>} : memref<8x8xf32, #tpu.memory_space<vmem>>, vector<8x8xf32>,
    %c0_25 = arith.constant 0 : index
    %c0_26 = arith.constant 0 : index
    %32 = vector.load %arg8[%c0_25, %c0_26] : memref<8x1xf32, #tpu.memory_space<vmem>>, vector<8x1xf32>
    tpu.vector_store %arg8[%c0_25, %c0_26], %11 {strides = array<i32>} : memref<8x1xf32, #tpu.memory_space<vmem>>, vector<8x1xf32>,
    %c0_i32_27 = arith.constant 0 : i32
    %33 = arith.cmpi eq, %arg3, %c0_i32_27 : i32
    %34 = arith.extui %33 : i1 to i32
    %c0_i32_28 = arith.constant 0 : i32
    %35 = arith.cmpi ne, %34, %c0_i32_28 : i32
    scf.if %35 {
      %c0_29 = arith.constant 0 : index
      %c0_30 = arith.constant 0 : index
      %36 = vector.load %arg10[%c0_29, %c0_30] : memref<8x8xf32, #tpu.memory_space<vmem>>, vector<8x8xf32>
      %c0_31 = arith.constant 0 : index
      %c0_32 = arith.constant 0 : index
      %37 = vector.load %arg9[%c0_31, %c0_32] : memref<8x1xf32, #tpu.memory_space<vmem>>, vector<8x1xf32>
      %38 = vector.broadcast %37 : vector<8x1xf32> to vector<8x8xf32>
      %39 = arith.divf %36, %38 : vector<8x8xf32>
      %c0_33 = arith.constant 0 : index
      %c0_34 = arith.constant 0 : index
      %c0_35 = arith.constant 0 : index
      %c0_36 = arith.constant 0 : index
      %40 = vector.load %arg7[%c0_33, %c0_34, %c0_35, %c0_36] : memref<1x1x8x8xf32, #tpu.memory_space<vmem>>, vector<1x1x8x8xf32>
      %41 = vector.shape_cast %40 : vector<1x1x8x8xf32> to vector<8x8xf32>
      %42 = vector.shape_cast %39 : vector<8x8xf32> to vector<1x1x8x8xf32>
      tpu.vector_store %arg7[%c0_33, %c0_34, %c0_35, %c0_36], %42 {strides = array<i32>} : memref<1x1x8x8xf32, #tpu.memory_space<vmem>>, vector<1x1x8x8xf32>,
    } else {
    }
    return
  }
  func.func @transform_0(%arg0: i32, %arg1: i32, %arg2: i32, %arg3: i32) -> (i32, i32, i32, i32) {
    %c0_i32 = arith.constant 0 : i32
    %c0_i32_0 = arith.constant 0 : i32
    return %arg0, %arg1, %arg2, %c0_i32 : i32, i32, i32, i32
  }
  func.func @transform_1(%arg0: i32, %arg1: i32, %arg2: i32, %arg3: i32) -> (i32, i32, i32, i32) {
    %c0_i32 = arith.constant 0 : i32
    %c0_i32_0 = arith.constant 0 : i32
    return %arg0, %arg1, %arg3, %c0_i32 : i32, i32, i32, i32
  }
  func.func @transform_2(%arg0: i32, %arg1: i32, %arg2: i32, %arg3: i32) -> (i32, i32, i32, i32) {
    %c0_i32 = arith.constant 0 : i32
    %c0_i32_0 = arith.constant 0 : i32
    return %arg0, %arg1, %arg3, %c0_i32 : i32, i32, i32, i32
  }
  func.func @transform_3(%arg0: i32, %arg1: i32, %arg2: i32, %arg3: i32) -> (i32, i32, i32, i32) {
    %c0_i32 = arith.constant 0 : i32
    %c0_i32_0 = arith.constant 0 : i32
    return %arg0, %arg1, %arg2, %c0_i32 : i32, i32, i32, i32
  }
}

module attributes {stable_mosaic.version = 11 : i64} {
  func.func @_proj_kernel(%arg0: i32, %arg1: i32, %arg2: i32, %arg3: memref<1x8x32xf32, #tpu.memory_space<vmem>>, %arg4: memref<32x32xbf16, #tpu.memory_space<vmem>>, %arg5: memref<1x32xf32, #tpu.memory_space<vmem>>, %arg6: memref<1x4x8x8xbf16, #tpu.memory_space<vmem>>, %arg7: memref<8x32xf32, #tpu.memory_space<vmem>>) attributes {dimension_semantics = [#tpu.dimension_semantics<parallel>, #tpu.dimension_semantics<parallel>, #tpu.dimension_semantics<arbitrary>], iteration_bounds = array<i64: 2, 1, 1>, scalar_prefetch = 0 : i64, scratch_operands = 1 : i64, tpu.core_type = #tpu.core_type<tc>, window_params = [{transform_indices = @transform_0, window_bounds = array<i64: 1, 8, 32>}, {transform_indices = @transform_1, window_bounds = array<i64: 32, 32>}, {pipeline_mode = #tpu.pipeline_mode<synchronous>, transform_indices = @transform_2, window_bounds = array<i64: 1, 32>}, {transform_indices = @transform_3, window_bounds = array<i64: 1, 4, 8, 8>}]} {
    %c0_i32 = arith.constant 0 : i32
    %0 = arith.cmpi eq, %arg2, %c0_i32 : i32
    %1 = arith.extui %0 : i1 to i32
    %c0_i32_0 = arith.constant 0 : i32
    %2 = arith.cmpi ne, %1, %c0_i32_0 : i32
    scf.if %2 {
      %cst_11 = arith.constant 0.000000e+00 : f32
      %14 = vector.broadcast %cst_11 : f32 to vector<8x32xf32>
      %c0_12 = arith.constant 0 : index
      %c0_13 = arith.constant 0 : index
      %15 = vector.load %arg7[%c0_12, %c0_13] : memref<8x32xf32, #tpu.memory_space<vmem>>, vector<8x32xf32>
      tpu.vector_store %arg7[%c0_12, %c0_13], %14 {strides = array<i32>} : memref<8x32xf32, #tpu.memory_space<vmem>>, vector<8x32xf32>,
    } else {
    }
    %c0 = arith.constant 0 : index
    %c0_1 = arith.constant 0 : index
    %c0_2 = arith.constant 0 : index
    %3 = vector.load %arg3[%c0, %c0_1, %c0_2] : memref<1x8x32xf32, #tpu.memory_space<vmem>>, vector<1x8x32xf32>
    %4 = vector.shape_cast %3 : vector<1x8x32xf32> to vector<8x32xf32>
    %5 = arith.truncf %4 : vector<8x32xf32> to vector<8x32xbf16>
    %c0_3 = arith.constant 0 : index
    %c0_4 = arith.constant 0 : index
    %6 = vector.load %arg7[%c0_3, %c0_4] : memref<8x32xf32, #tpu.memory_space<vmem>>, vector<8x32xf32>
    %c0_5 = arith.constant 0 : index
    %c0_6 = arith.constant 0 : index
    %7 = vector.load %arg4[%c0_5, %c0_6] : memref<32x32xbf16, #tpu.memory_space<vmem>>, vector<32x32xbf16>
    %cst = arith.constant dense<0.000000e+00> : vector<8x32xf32>
    %8 = tpu.matmul %5, %7, %cst {dimension_numbers = #tpu.dot_dimension_numbers<[1], [0], [0], [1], [0, 0, 1, 1], [], []>} : vector<8x32xbf16>, vector<32x32xbf16>, vector<8x32xf32> -> vector<8x32xf32>
    %9 = arith.addf %6, %8 : vector<8x32xf32>
    %c0_7 = arith.constant 0 : index
    %c0_8 = arith.constant 0 : index
    %10 = vector.load %arg7[%c0_7, %c0_8] : memref<8x32xf32, #tpu.memory_space<vmem>>, vector<8x32xf32>
    tpu.vector_store %arg7[%c0_7, %c0_8], %9 {strides = array<i32>} : memref<8x32xf32, #tpu.memory_space<vmem>>, vector<8x32xf32>,
    %c0_i32_9 = arith.constant 0 : i32
    %11 = arith.cmpi eq, %arg2, %c0_i32_9 : i32
    %12 = arith.extui %11 : i1 to i32
    %c0_i32_10 = arith.constant 0 : i32
    %13 = arith.cmpi ne, %12, %c0_i32_10 : i32
    scf.if %13 {
      %c0_11 = arith.constant 0 : index
      %c0_12 = arith.constant 0 : index
      %14 = vector.load %arg7[%c0_11, %c0_12] : memref<8x32xf32, #tpu.memory_space<vmem>>, vector<8x32xf32>
      %c0_13 = arith.constant 0 : index
      %c0_14 = arith.constant 0 : index
      %15 = vector.load %arg5[%c0_13, %c0_14] : memref<1x32xf32, #tpu.memory_space<vmem>>, vector<1x32xf32>
      %16 = vector.shape_cast %15 : vector<1x32xf32> to vector<32xf32>
      %17 = vector.shape_cast %16 : vector<32xf32> to vector<1x32xf32>
      %18 = vector.broadcast %17 : vector<1x32xf32> to vector<8x32xf32>
      %19 = arith.addf %14, %18 : vector<8x32xf32>
      %20 = arith.truncf %19 : vector<8x32xf32> to vector<8x32xbf16>
      %21 = vector.extract_strided_slice %20 {offsets = [0, 0], sizes = [8, 8], strides = [1, 1]} : vector<8x32xbf16> to vector<8x8xbf16>
      %c0_15 = arith.constant 0 : index
      %c0_16 = arith.constant 0 : index
      %c0_17 = arith.constant 0 : index
      %c0_18 = arith.constant 0 : index
      %22 = vector.load %arg6[%c0_15, %c0_16, %c0_17, %c0_18] : memref<1x4x8x8xbf16, #tpu.memory_space<vmem>>, vector<1x1x8x8xbf16>
      %23 = vector.shape_cast %22 : vector<1x1x8x8xbf16> to vector<8x8xbf16>
      %24 = vector.shape_cast %21 : vector<8x8xbf16> to vector<1x1x8x8xbf16>
      tpu.vector_store %arg6[%c0_15, %c0_16, %c0_17, %c0_18], %24 {strides = array<i32>} : memref<1x4x8x8xbf16, #tpu.memory_space<vmem>>, vector<1x1x8x8xbf16>,
      %25 = vector.extract_strided_slice %20 {offsets = [0, 8], sizes = [8, 8], strides = [1, 1]} : vector<8x32xbf16> to vector<8x8xbf16>
      %c0_19 = arith.constant 0 : index
      %c1 = arith.constant 1 : index
      %c0_20 = arith.constant 0 : index
      %c0_21 = arith.constant 0 : index
      %26 = vector.load %arg6[%c0_19, %c1, %c0_20, %c0_21] : memref<1x4x8x8xbf16, #tpu.memory_space<vmem>>, vector<1x1x8x8xbf16>
      %27 = vector.shape_cast %26 : vector<1x1x8x8xbf16> to vector<8x8xbf16>
      %28 = vector.shape_cast %25 : vector<8x8xbf16> to vector<1x1x8x8xbf16>
      tpu.vector_store %arg6[%c0_19, %c1, %c0_20, %c0_21], %28 {strides = array<i32>} : memref<1x4x8x8xbf16, #tpu.memory_space<vmem>>, vector<1x1x8x8xbf16>,
      %29 = vector.extract_strided_slice %20 {offsets = [0, 16], sizes = [8, 8], strides = [1, 1]} : vector<8x32xbf16> to vector<8x8xbf16>
      %c0_22 = arith.constant 0 : index
      %c2 = arith.constant 2 : index
      %c0_23 = arith.constant 0 : index
      %c0_24 = arith.constant 0 : index
      %30 = vector.load %arg6[%c0_22, %c2, %c0_23, %c0_24] : memref<1x4x8x8xbf16, #tpu.memory_space<vmem>>, vector<1x1x8x8xbf16>
      %31 = vector.shape_cast %30 : vector<1x1x8x8xbf16> to vector<8x8xbf16>
      %32 = vector.shape_cast %29 : vector<8x8xbf16> to vector<1x1x8x8xbf16>
      tpu.vector_store %arg6[%c0_22, %c2, %c0_23, %c0_24], %32 {strides = array<i32>} : memref<1x4x8x8xbf16, #tpu.memory_space<vmem>>, vector<1x1x8x8xbf16>,
      %33 = vector.extract_strided_slice %20 {offsets = [0, 24], sizes = [8, 8], strides = [1, 1]} : vector<8x32xbf16> to vector<8x8xbf16>
      %c0_25 = arith.constant 0 : index
      %c3 = arith.constant 3 : index
      %c0_26 = arith.constant 0 : index
      %c0_27 = arith.constant 0 : index
      %34 = vector.load %arg6[%c0_25, %c3, %c0_26, %c0_27] : memref<1x4x8x8xbf16, #tpu.memory_space<vmem>>, vector<1x1x8x8xbf16>
      %35 = vector.shape_cast %34 : vector<1x1x8x8xbf16> to vector<8x8xbf16>
      %36 = vector.shape_cast %33 : vector<8x8xbf16> to vector<1x1x8x8xbf16>
      tpu.vector_store %arg6[%c0_25, %c3, %c0_26, %c0_27], %36 {strides = array<i32>} : memref<1x4x8x8xbf16, #tpu.memory_space<vmem>>, vector<1x1x8x8xbf16>,
    } else {
    }
    return
  }
  func.func @transform_0(%arg0: i32, %arg1: i32, %arg2: i32) -> (i32, i32, i32) {
    %c0_i32 = arith.constant 0 : i32
    return %arg0, %arg1, %arg2 : i32, i32, i32
  }
  func.func @transform_1(%arg0: i32, %arg1: i32, %arg2: i32) -> (i32, i32) {
    %c0_i32 = arith.constant 0 : i32
    %c0_i32_0 = arith.constant 0 : i32
    return %arg2, %c0_i32 : i32, i32
  }
  func.func @transform_2(%arg0: i32, %arg1: i32, %arg2: i32) -> (i32, i32) {
    %c0_i32 = arith.constant 0 : i32
    %c0_i32_0 = arith.constant 0 : i32
    %c0_i32_1 = arith.constant 0 : i32
    return %c0_i32, %c0_i32_0 : i32, i32
  }
  func.func @transform_3(%arg0: i32, %arg1: i32, %arg2: i32) -> (i32, i32, i32, i32) {
    %c0_i32 = arith.constant 0 : i32
    %c0_i32_0 = arith.constant 0 : i32
    %c0_i32_1 = arith.constant 0 : i32
    return %arg0, %c0_i32, %arg1, %c0_i32_0 : i32, i32, i32, i32
  }
}

module attributes {stable_mosaic.version = 11 : i64} {
  func.func @_proj_kernel(%arg0: i32, %arg1: i32, %arg2: i32, %arg3: memref<1x8x32xf32, #tpu.memory_space<vmem>>, %arg4: memref<32x32xbf16, #tpu.memory_space<vmem>>, %arg5: memref<1x32xf32, #tpu.memory_space<vmem>>, %arg6: memref<1x4x8x8xbf16, #tpu.memory_space<vmem>>, %arg7: memref<8x32xf32, #tpu.memory_space<vmem>>) attributes {dimension_semantics = [#tpu.dimension_semantics<parallel>, #tpu.dimension_semantics<parallel>, #tpu.dimension_semantics<arbitrary>], iteration_bounds = array<i64: 2, 1, 1>, scalar_prefetch = 0 : i64, scratch_operands = 1 : i64, tpu.core_type = #tpu.core_type<tc>, window_params = [{transform_indices = @transform_0, window_bounds = array<i64: 1, 8, 32>}, {transform_indices = @transform_1, window_bounds = array<i64: 32, 32>}, {pipeline_mode = #tpu.pipeline_mode<synchronous>, transform_indices = @transform_2, window_bounds = array<i64: 1, 32>}, {transform_indices = @transform_3, window_bounds = array<i64: 1, 4, 8, 8>}]} {
    %c0_i32 = arith.constant 0 : i32
    %0 = arith.cmpi eq, %arg2, %c0_i32 : i32
    %1 = arith.extui %0 : i1 to i32
    %c0_i32_0 = arith.constant 0 : i32
    %2 = arith.cmpi ne, %1, %c0_i32_0 : i32
    scf.if %2 {
      %cst_11 = arith.constant 0.000000e+00 : f32
      %14 = vector.broadcast %cst_11 : f32 to vector<8x32xf32>
      %c0_12 = arith.constant 0 : index
      %c0_13 = arith.constant 0 : index
      %15 = vector.load %arg7[%c0_12, %c0_13] : memref<8x32xf32, #tpu.memory_space<vmem>>, vector<8x32xf32>
      tpu.vector_store %arg7[%c0_12, %c0_13], %14 {strides = array<i32>} : memref<8x32xf32, #tpu.memory_space<vmem>>, vector<8x32xf32>,
    } else {
    }
    %c0 = arith.constant 0 : index
    %c0_1 = arith.constant 0 : index
    %c0_2 = arith.constant 0 : index
    %3 = vector.load %arg3[%c0, %c0_1, %c0_2] : memref<1x8x32xf32, #tpu.memory_space<vmem>>, vector<1x8x32xf32>
    %4 = vector.shape_cast %3 : vector<1x8x32xf32> to vector<8x32xf32>
    %5 = arith.truncf %4 : vector<8x32xf32> to vector<8x32xbf16>
    %c0_3 = arith.constant 0 : index
    %c0_4 = arith.constant 0 : index
    %6 = vector.load %arg7[%c0_3, %c0_4] : memref<8x32xf32, #tpu.memory_space<vmem>>, vector<8x32xf32>
    %c0_5 = arith.constant 0 : index
    %c0_6 = arith.constant 0 : index
    %7 = vector.load %arg4[%c0_5, %c0_6] : memref<32x32xbf16, #tpu.memory_space<vmem>>, vector<32x32xbf16>
    %cst = arith.constant dense<0.000000e+00> : vector<8x32xf32>
    %8 = tpu.matmul %5, %7, %cst {dimension_numbers = #tpu.dot_dimension_numbers<[1], [0], [0], [1], [0, 0, 1, 1], [], []>} : vector<8x32xbf16>, vector<32x32xbf16>, vector<8x32xf32> -> vector<8x32xf32>
    %9 = arith.addf %6, %8 : vector<8x32xf32>
    %c0_7 = arith.constant 0 : index
    %c0_8 = arith.constant 0 : index
    %10 = vector.load %arg7[%c0_7, %c0_8] : memref<8x32xf32, #tpu.memory_space<vmem>>, vector<8x32xf32>
    tpu.vector_store %arg7[%c0_7, %c0_8], %9 {strides = array<i32>} : memref<8x32xf32, #tpu.memory_space<vmem>>, vector<8x32xf32>,
    %c0_i32_9 = arith.constant 0 : i32
    %11 = arith.cmpi eq, %arg2, %c0_i32_9 : i32
    %12 = arith.extui %11 : i1 to i32
    %c0_i32_10 = arith.constant 0 : i32
    %13 = arith.cmpi ne, %12, %c0_i32_10 : i32
    scf.if %13 {
      %c0_11 = arith.constant 0 : index
      %c0_12 = arith.constant 0 : index
      %14 = vector.load %arg7[%c0_11, %c0_12] : memref<8x32xf32, #tpu.memory_space<vmem>>, vector<8x32xf32>
      %c0_13 = arith.constant 0 : index
      %c0_14 = arith.constant 0 : index
      %15 = vector.load %arg5[%c0_13, %c0_14] : memref<1x32xf32, #tpu.memory_space<vmem>>, vector<1x32xf32>
      %16 = vector.shape_cast %15 : vector<1x32xf32> to vector<32xf32>
      %17 = vector.shape_cast %16 : vector<32xf32> to vector<1x32xf32>
      %18 = vector.broadcast %17 : vector<1x32xf32> to vector<8x32xf32>
      %19 = arith.addf %14, %18 : vector<8x32xf32>
      %cst_15 = arith.constant 0.353553385 : f32
      %20 = vector.broadcast %cst_15 : f32 to vector<8x32xf32>
      %21 = arith.mulf %19, %20 : vector<8x32xf32>
      %22 = arith.truncf %21 : vector<8x32xf32> to vector<8x32xbf16>
      %23 = vector.extract_strided_slice %22 {offsets = [0, 0], sizes = [8, 8], strides = [1, 1]} : vector<8x32xbf16> to vector<8x8xbf16>
      %c0_16 = arith.constant 0 : index
      %c0_17 = arith.constant 0 : index
      %c0_18 = arith.constant 0 : index
      %c0_19 = arith.constant 0 : index
      %24 = vector.load %arg6[%c0_16, %c0_17, %c0_18, %c0_19] : memref<1x4x8x8xbf16, #tpu.memory_space<vmem>>, vector<1x1x8x8xbf16>
      %25 = vector.shape_cast %24 : vector<1x1x8x8xbf16> to vector<8x8xbf16>
      %26 = vector.shape_cast %23 : vector<8x8xbf16> to vector<1x1x8x8xbf16>
      tpu.vector_store %arg6[%c0_16, %c0_17, %c0_18, %c0_19], %26 {strides = array<i32>} : memref<1x4x8x8xbf16, #tpu.memory_space<vmem>>, vector<1x1x8x8xbf16>,
      %27 = vector.extract_strided_slice %22 {offsets = [0, 8], sizes = [8, 8], strides = [1, 1]} : vector<8x32xbf16> to vector<8x8xbf16>
      %c0_20 = arith.constant 0 : index
      %c1 = arith.constant 1 : index
      %c0_21 = arith.constant 0 : index
      %c0_22 = arith.constant 0 : index
      %28 = vector.load %arg6[%c0_20, %c1, %c0_21, %c0_22] : memref<1x4x8x8xbf16, #tpu.memory_space<vmem>>, vector<1x1x8x8xbf16>
      %29 = vector.shape_cast %28 : vector<1x1x8x8xbf16> to vector<8x8xbf16>
      %30 = vector.shape_cast %27 : vector<8x8xbf16> to vector<1x1x8x8xbf16>
      tpu.vector_store %arg6[%c0_20, %c1, %c0_21, %c0_22], %30 {strides = array<i32>} : memref<1x4x8x8xbf16, #tpu.memory_space<vmem>>, vector<1x1x8x8xbf16>,
      %31 = vector.extract_strided_slice %22 {offsets = [0, 16], sizes = [8, 8], strides = [1, 1]} : vector<8x32xbf16> to vector<8x8xbf16>
      %c0_23 = arith.constant 0 : index
      %c2 = arith.constant 2 : index
      %c0_24 = arith.constant 0 : index
      %c0_25 = arith.constant 0 : index
      %32 = vector.load %arg6[%c0_23, %c2, %c0_24, %c0_25] : memref<1x4x8x8xbf16, #tpu.memory_space<vmem>>, vector<1x1x8x8xbf16>
      %33 = vector.shape_cast %32 : vector<1x1x8x8xbf16> to vector<8x8xbf16>
      %34 = vector.shape_cast %31 : vector<8x8xbf16> to vector<1x1x8x8xbf16>
      tpu.vector_store %arg6[%c0_23, %c2, %c0_24, %c0_25], %34 {strides = array<i32>} : memref<1x4x8x8xbf16, #tpu.memory_space<vmem>>, vector<1x1x8x8xbf16>,
      %35 = vector.extract_strided_slice %22 {offsets = [0, 24], sizes = [8, 8], strides = [1, 1]} : vector<8x32xbf16> to vector<8x8xbf16>
      %c0_26 = arith.constant 0 : index
      %c3 = arith.constant 3 : index
      %c0_27 = arith.constant 0 : index
      %c0_28 = arith.constant 0 : index
      %36 = vector.load %arg6[%c0_26, %c3, %c0_27, %c0_28] : memref<1x4x8x8xbf16, #tpu.memory_space<vmem>>, vector<1x1x8x8xbf16>
      %37 = vector.shape_cast %36 : vector<1x1x8x8xbf16> to vector<8x8xbf16>
      %38 = vector.shape_cast %35 : vector<8x8xbf16> to vector<1x1x8x8xbf16>
      tpu.vector_store %arg6[%c0_26, %c3, %c0_27, %c0_28], %38 {strides = array<i32>} : memref<1x4x8x8xbf16, #tpu.memory_space<vmem>>, vector<1x1x8x8xbf16>,
    } else {
    }
    return
  }
  func.func @transform_0(%arg0: i32, %arg1: i32, %arg2: i32) -> (i32, i32, i32) {
    %c0_i32 = arith.constant 0 : i32
    return %arg0, %arg1, %arg2 : i32, i32, i32
  }
  func.func @transform_1(%arg0: i32, %arg1: i32, %arg2: i32) -> (i32, i32) {
    %c0_i32 = arith.constant 0 : i32
    %c0_i32_0 = arith.constant 0 : i32
    return %arg2, %c0_i32 : i32, i32
  }
  func.func @transform_2(%arg0: i32, %arg1: i32, %arg2: i32) -> (i32, i32) {
    %c0_i32 = arith.constant 0 : i32
    %c0_i32_0 = arith.constant 0 : i32
    %c0_i32_1 = arith.constant 0 : i32
    return %c0_i32, %c0_i32_0 : i32, i32
  }
  func.func @transform_3(%arg0: i32, %arg1: i32, %arg2: i32) -> (i32, i32, i32, i32) {
    %c0_i32 = arith.constant 0 : i32
    %c0_i32_0 = arith.constant 0 : i32
    %c0_i32_1 = arith.constant 0 : i32
    return %arg0, %c0_i32, %arg1, %c0_i32_0 : i32, i32, i32, i32
  }
}

</mosaic_0001>

<bundles_post_ra>
// kernel: encoder_self_attention.5
= control target key start
LH: loop header
LB: loop body
LE: loop exit
PB: predicated region body
PF: predicated region fallthrough
CT: control target
= control target key end

     0   :  { %8 = vsyncpa [#allocation4], 0  ;;  %s718_s0 = inlined_call_operand.hbm [shape: f32[2,8,32], index: 0, kind: input, shape index: {}]   ;;  %s719_s1 = inlined_call_operand.vmem [shape: bf16[32,32], index: 1, kind: input, shape index: {}]   ;;  %s720_s2 = inlined_call_operand.vmem [shape: f32[1,32], index: 2, kind: input, shape index: {}]   ;;  %s721_s3 = inlined_call_operand.vmem [shape: bf16[2,4,8,8], index: 3, kind: output, shape index: {}]  }
   0x1   :  { %10 = vsyncpa [#allocation4 + $0x1], 0  ;;  %s621_s12 = smov 0   ;;  %s623_s13 = smov 0  }
   0x2   :  { %s625_s14 = smov 0   ;;  %s627_s15 = smov 0  }
   0x3   :  { %s629_s16 = smov 0   ;;  %s631_s17 = smov 0  }
   0x4 LB: > { %s427_s18 = sadd.s32 4294967295, %s595_s17   ;;  %s35_s19 = sadd.s32 1, %s591_s16  ;;  %s595_s17 = sphi %s631_s17, %s16_s17   ;;  %s591_s16 = sphi %s629_s16, %s728_s16   ;;  %s587_s15 = sphi %s627_s15, %s727_s15   ;;  %s583_s14 = sphi %s625_s14, %s726_s14   ;;  %s579_s13 = sphi %s623_s13, %s725_s13   ;;  %s575_s12 = sphi %s621_s12, %s724_s12  }
   0x5   : > { %p37_p0 = scmp.ge.s32.totalorder %s35_s19, 2  ;;  %s46_s20 = sadd.s32 1, %s583_s14 }
   0x6   : > { %p53_p1 = scmp.ne.s32.totalorder %s583_s14, %s579_s13  ;;  %p54_p2 = scmp.eq.s32.totalorder %s595_s17, 0 }
   0x7   : > { %s730_s19 = smov (%p37_p0, %s35_s19), 0  ;;  %p59_p4 = scmp.ne.s32.totalorder %s579_s13, %s575_s12 }
   0x8   : > { %p657_p3 = por %p54_p2, %p53_p1  ;;  %s39_s22 = ssub.s32 %s591_s16, %s730_s19 }
   0x9   : > { %p60_p5 = scmp.eq.s32.totalorder %s427_s18, 0  ;;  %p44_p6 = scmp.eq.s32.totalorder %s39_s22, 0 }
   0xa   : > { %p461_p8 = scmp.lt.s32.totalorder %s595_s17, 2  ;;  %s170_s25 = sand.u32 1, %s583_s14  }
   0xb   : > { %p664_p7 = por %p60_p5, %p59_p4  ;;  %s433_s26 = sshll.u32 %s591_s16, 3 }
   0xc   : > { %s670_s24 = scalar_select %p44_p6, %s583_s14, %s46_s20  }
   0xd   : > { %s432_s27 = sshll.u32 %s170_s25, 3  ;;  %s180_s30 = scalar_lea.hbm %s718_s0, %s433_s26 }
   0xe   : > { %s182_s4 = sshll.u32 %s180_s30, 4  ;;  %s174_s5 = scalar_lea.vmem [#allocation3], %s432_s27  ;;  %s183_s4 = int_to_ptr.hbm [resolvable:$true] %s182_s4 }
   0xf   : > { %s184_s6 = sshll.u32 %s174_s5, 4  ;;  %p458_p9 = pnand %p461_p8, %p657_p3  ;;  %s185_s6 = int_to_ptr.vmem [resolvable:$true] %s184_s6 }
  0x10   : > { %p434_p10 = scmp.ge.s32.totalorder %s595_s17, 1  ;;  %p189_p11 = scmp.lt.s32.totalorder %s595_s17, 3 }
  0x11   : > { %s171_s7 = scalar_lea.sflag [#allocation4], %s170_s25 }
  0x12   : > { %460 = dma.hbm_to_vmem [thread:$0]  (!%p458_p9), %s183_s4, 128, %s185_s6, %s171_s7  }
  0x13   : > { %p190_p12 = pnand %p434_p10, %p189_p11 }
  0x14   : > { %s195_s8 = sand.u32 (!%p190_p12), 1, %s579_s13  }
  0x15   : > { %193 = sbr.rel (%p190_p12) target bundleno = 299 (0x12b), region = 32  ;;  %s435_s9 = sshll.u32 (!%p190_p12), %s195_s8, 3 }
  0x16   : > { %s196_s10 = scalar_lea.sflag (!%p190_p12), [#allocation4], %s195_s8  ;;  %s199_s11 = scalar_lea.vmem (!%p190_p12), [#allocation3], %s435_s9 }
  0x1a   : > { %570 = dma.done.wait (%p664_p7), %s196_s10, 128  }
  0x1b   : > { %572 = vsyncadd (%p664_p7), %s196_s10, 4294967168  ;;  %vm250_vm0 = vcmask 261120   ;;  %v597_v0 = vmov 0.0   ;;  %v454_v1 = vld [vmem:[%s719_s1 + $0x8] sm:$0xff]  ;;  %v453_v2 = vld [vmem:[%s719_s1] sm:$0xff]  ;;  %p237_p13 = scmp.lt.s32.totalorder %s587_s15, 1 }
  0x1c   : > { %251 = vst.msk [vmem:[#allocation2] sm:$0xff] %vm250_vm0, %v597_v0  ;;  %281 = vmatpush.bf16.msra.mxu0 %v454_v1  ;;  %v252_v3 = vld [vmem:[%s199_s11] sm:$0xff]  ;;  %v514_v8 = vld [vmem:[%s720_s2] ss:$0 sm:$0xff]  ;;  %vm300_vm1 = vcmask 60416   ;;  %s598_s29 = smov 104  }
  0x1d   : > { %v253_v4 = vpack.c.bf16 %v252_v3, %v252_v3  ;;  %s732_s15 = smov (!%p237_p13, %s587_s15), 1  ;;  %s599_s30 = smov 120  }
  0x1e   : > { %s452_s25 = sshll.u32 %s732_s15, 4  ;;  %s600_s4 = smov 112  }
  0x1f   : > { %s244_s28 = scalar_lea.vmem %s721_s3, %s452_s25 }
  0x20   : > { %282 = vmatpush.bf16.msra.mxu0 %v453_v2 }
  0x23   : > { %446 = vmatmul.msk.bf16.vlgmr.msra.gmra.mxu0 %vm250_vm0, %v253_v4  ;;  %v254_v5 = vld [vmem:[#allocation2] sm:$0xff] }
  0xa0   : > { %v284_v6 = vpop.f32.mrf.mxu0 }
  0xa1   : > { %v288_v7 = vadd.f32 %v284_v6, %v254_v5 }
  0xa3   : > { %289 = vst.msk [vmem:[#allocation2] sm:$0xff] %vm250_vm0, %v288_v7 }
  0xa8   : > { %v286_v9 = vpop.f32.mrf.mxu0 }
  0xaa   : > { %v293_v10 = vld [vmem:[#allocation2] sm:$0xff] }
  0xab   : > { %v298_v11 = vadd.f32 %v514_v8, %v293_v10 }
  0xad   : > { %v299_v12 = vpack.c.bf16 %v298_v11, %v298_v11 }
  0xaf   : > { %313 = vrot.lane.b32.xlu1 %v299_v12, %s598_s29  ;;  %303 = vrot.lane.b32.xlu0 %v299_v12, %s599_s30  ;;  %301 = vst.msk [vmem:[%s244_s28] sm:$0xf] %vm300_vm1, %v299_v12 }
  0xb7   : > { %308 = vrot.lane.b32.xlu0 %v299_v12, %s600_s4 }
 0x121   : > { %v314_v13 = vpop.permute.xlu1 %313  ;;  %v304_v14 = vpop.permute.xlu0 %303 }
 0x122   : > { %449 = vst.msk [vmem:[%s244_s28 + $0xc] sm:$0xf] %vm300_vm1, %v314_v13 }
 0x123   : > { %447 = vst.msk [vmem:[%s244_s28 + $0x4] sm:$0xf] %vm300_vm1, %v304_v14 }
 0x129   : > { %v309_v15 = vpop.permute.xlu0 %308 }
 0x12a   : > { %448 = vst.msk [vmem:[%s244_s28 + $0x8] sm:$0xf] %vm300_vm1, %v309_v15 }
 0x12b PF: > { %s16_s17 = sadd.s32 1, %s595_s17   ;;  %s724_s12 = smov %s579_s13 }
 0x12c   : > { %p13_p0 = scmp.ge.s32.totalorder %s16_s17, 4   ;;  %s725_s13 = smov %s583_s14 }
 0x12d   : > { %s726_s14 = smov %s670_s24  ;;  %s727_s15 = smov %s591_s16 }
 0x12e   : > { %s728_s16 = smov %s730_s19  ;;  %15 = sbr.rel (!%p13_p0) target bundleno = 4 (0x4), region = 86 }
 0x133   :  { %345 = vsyncpa [#allocation4], 1 }
 0x134   :  { %347 = vsyncpa [#allocation4 + $0x1], 1 }

// kernel: encoder_self_attention.4
= control target key start
LH: loop header
LB: loop body
LE: loop exit
PB: predicated region body
PF: predicated region fallthrough
CT: control target
= control target key end

     0   :  { %8 = vsyncpa [#allocation4], 0  ;;  %s857_s0 = inlined_call_operand.hbm [shape: f32[2,8,32], index: 0, kind: input, shape index: {}]   ;;  %s858_s1 = inlined_call_operand.hbm [shape: bf16[32,32], index: 1, kind: input, shape index: {}]   ;;  %s859_s2 = inlined_call_operand.hbm [shape: f32[1,32], index: 2, kind: input, shape index: {}]   ;;  %s860_s3 = inlined_call_operand.vmem [shape: bf16[2,4,8,8], index: 3, kind: output, shape index: {}]  }
   0x1   :  { %10 = vsyncpa [#allocation4 + $0x1], 0 }
   0x2   :  { %11 = vsyncpa [#allocation6], 0  ;;  %s740_s12 = smov 0   ;;  %s742_s13 = smov 0  }
   0x3   :  { %s744_s14 = smov 0   ;;  %s746_s15 = smov 0  }
   0x4   :  { %s748_s16 = smov 0   ;;  %s750_s17 = smov 0  }
   0x5 LB: > { %s452_s18 = sadd.s32 4294967295, %s710_s17   ;;  %p454_p0 = scmp.ge.s32.totalorder %s710_s17, 1  ;;  %s710_s17 = sphi %s750_s17, %s17_s17   ;;  %s706_s16 = sphi %s748_s16, %s869_s16   ;;  %s702_s15 = sphi %s746_s15, %s868_s15   ;;  %s698_s14 = sphi %s744_s14, %s867_s14   ;;  %s694_s13 = sphi %s742_s13, %s866_s13   ;;  %s690_s12 = sphi %s740_s12, %s865_s12  }
   0x6   : > { %p772_p1 = scmp.eq.s32.totalorder %s452_s18, 0  ;;  %p146_p2 = scmp.lt.s32.totalorder %s710_s17, 3 }
   0x7   : > { %s160_s22 = sshll.u32 %s858_s1, 4  ;;  %s712_s24 = smov [#allocation5]   ;;  %s161_s22 = int_to_ptr.hbm [resolvable:$true] %s160_s22 }
   0x8   : > { %p780_p3 = pnand %p454_p0, %p146_p2  ;;  %s162_s25 = sshll.u32 %s712_s24, 4  ;;  %s163_s25 = int_to_ptr.vmem [resolvable:$true] %s162_s25 }
   0x9   : > { %s175_s28 = sshll.u32 %s859_s2, 4  ;;  %s713_s29 = smov 64   ;;  %s176_s28 = int_to_ptr.hbm [resolvable:$true] %s175_s28 }
   0xa   : > { %p493_p4 = pneg %p780_p3  ;;  %s714_s30 = smov 4  }
   0xb   : > { %s715_s4 = smov [#allocation7]   ;;  %s36_s6 = sadd.s32 1, %s706_s16 }
   0xc   : > { %p494_p5 = pnand %p493_p4, %p772_p1  ;;  %s177_s5 = sshll.u32 %s715_s4, 4  ;;  %s178_s5 = int_to_ptr.vmem [resolvable:$true] %s177_s5 }
   0xd   : > { %s47_s7 = sadd.s32 1, %s698_s14  ;;  %p38_p6 = scmp.ge.s32.totalorder %s36_s6, 2 }
   0xe   : > { %496 = dma.hbm_to_vmem [thread:$0]  (!%p494_p5), %s161_s22, 256, %s163_s25, [#allocation6], %s713_s29, %s713_s29, %s714_s30  }
   0xf   : > { %499 = dma.hbm_to_vmem [thread:$0]  (!%p494_p5), %s176_s28, 16, %s178_s5, [#allocation6]  }
  0x10   : > { %p54_p7 = scmp.ne.s32.totalorder %s698_s14, %s694_s13  ;;  %p55_p8 = scmp.eq.s32.totalorder %s710_s17, 0 }
  0x11   : > { %p60_p9 = scmp.ne.s32.totalorder %s694_s13, %s690_s12  ;;  %s871_s6 = smov (%p38_p6, %s36_s6), 0 }
  0x12   : > { %p800_p10 = por %p55_p8, %p54_p7  ;;  %s40_s10 = ssub.s32 %s706_s16, %s871_s6 }
  0x13   : > { %p806_p11 = por %p772_p1, %p60_p9  ;;  %p506_p12 = scmp.lt.s32.totalorder %s710_s17, 2 }
  0x14   : > { %p45_p13 = scmp.eq.s32.totalorder %s40_s10, 0  ;;  %s188_s11 = sand.u32 1, %s698_s14  }
  0x15   : > { %s458_s18 = sshll.u32 %s188_s11, 3  ;;  %s459_s12 = sshll.u32 %s706_s16, 3 }
  0x16   : > { %s815_s20 = scalar_select %p45_p13, %s698_s14, %s47_s7  }
  0x17   : > { %s198_s24 = scalar_lea.hbm %s857_s0, %s459_s12  ;;  %s192_s25 = scalar_lea.vmem [#allocation3], %s458_s18 }
  0x18   : > { %s202_s26 = sshll.u32 %s192_s25, 4  ;;  %s200_s27 = sshll.u32 %s198_s24, 4  ;;  %s203_s26 = int_to_ptr.vmem [resolvable:$true] %s202_s26  ;;  %s201_s27 = int_to_ptr.hbm [resolvable:$true] %s200_s27 }
  0x19   : > { %p501_p0 = pnand %p506_p12, %p800_p10  ;;  %s189_s28 = scalar_lea.sflag [#allocation4], %s188_s11 }
  0x1a   : > { %211 = sbr.rel (%p780_p3) target bundleno = 308 (0x134), region = 32  ;;  %s213_s29 = sand.u32 (!%p780_p3), 1, %s694_s13  }
  0x1b   : > { %503 = dma.hbm_to_vmem [thread:$0]  (!%p501_p0), %s201_s27, 128, %s203_s26, %s189_s28  }
  0x1c   : > { %s461_s30 = sshll.u32 (!%p780_p3), %s213_s29, 3  ;;  %s214_s4 = scalar_lea.sflag (!%p780_p3), [#allocation4], %s213_s29 }
  0x1d   : > { %s217_s5 = scalar_lea.vmem (!%p780_p3), [#allocation3], %s461_s30 }
  0x1f   : > { %681 = dma.done.wait (%p806_p11), %s214_s4, 128  }
  0x20   : > { %683 = vsyncadd (%p806_p11), %s214_s4, 4294967168 }
  0x21   : > { %685 = dma.done.wait (%p772_p1), [#allocation6], 272  }
  0x22   : > { %687 = vsyncadd (%p772_p1), [#allocation6], 4294967024  ;;  %vm268_vm0 = vcmask 261120   ;;  %v716_v0 = vmov 0.0   ;;  %v482_v1 = vld [vmem:[#allocation5 + $0x8] sm:$0xff]  ;;  %v481_v2 = vld [vmem:[#allocation5] sm:$0xff] }
  0x23   : > { %269 = vst.msk [vmem:[#allocation2] sm:$0xff] %vm268_vm0, %v716_v0  ;;  %299 = vmatpush.bf16.msra.mxu0 %v482_v1  ;;  %v270_v3 = vld [vmem:[%s217_s5] sm:$0xff]  ;;  %p255_p2 = scmp.lt.s32.totalorder %s702_s15, 1  ;;  %vm319_vm1 = vcmask 60416   ;;  %s717_s9 = smov 104  }
  0x24   : > { %v271_v4 = vpack.c.bf16 %v270_v3, %v270_v3  ;;  %v565_v8 = vld [vmem:[#allocation7] ss:$0 sm:$0xff]  ;;  %s718_s10 = smov 120   ;;  %s719_s11 = smov 112  }
  0x25   : > { %s873_s15 = smov (!%p255_p2, %s702_s15), 1 }
  0x26   : > { %s480_s19 = sshll.u32 %s873_s15, 4 }
  0x27   : > { %300 = vmatpush.bf16.msra.mxu0 %v481_v2  ;;  %s262_s8 = scalar_lea.vmem %s860_s3, %s480_s19 }
  0x2a   : > { %474 = vmatmul.msk.bf16.vlgmr.msra.gmra.mxu0 %vm268_vm0, %v271_v4  ;;  %v272_v5 = vld [vmem:[#allocation2] sm:$0xff] }
  0xa7   : > { %v302_v6 = vpop.f32.mrf.mxu0 }
  0xa8   : > { %v306_v7 = vadd.f32 %v302_v6, %v272_v5 }
  0xaa   : > { %307 = vst.msk [vmem:[#allocation2] sm:$0xff] %vm268_vm0, %v306_v7 }
  0xaf   : > { %v304_v9 = vpop.f32.mrf.mxu0 }
  0xb1   : > { %v311_v10 = vld [vmem:[#allocation2] sm:$0xff] }
  0xb2   : > { %v316_v11 = vadd.f32 %v565_v8, %v311_v10 }
  0xb4   : > { %v317_v12 = vmul.f32 0.35355338, %v316_v11 }
  0xb6   : > { %v318_v13 = vpack.c.bf16 %v317_v12, %v317_v12 }
  0xb8   : > { %332 = vrot.lane.b32.xlu1 %v318_v13, %s717_s9  ;;  %322 = vrot.lane.b32.xlu0 %v318_v13, %s718_s10  ;;  %320 = vst.msk [vmem:[%s262_s8] sm:$0xf] %vm319_vm1, %v318_v13 }
  0xc0   : > { %327 = vrot.lane.b32.xlu0 %v318_v13, %s719_s11 }
 0x12a   : > { %v333_v14 = vpop.permute.xlu1 %332  ;;  %v323_v15 = vpop.permute.xlu0 %322 }
 0x12b   : > { %477 = vst.msk [vmem:[%s262_s8 + $0xc] sm:$0xf] %vm319_vm1, %v333_v14 }
 0x12c   : > { %475 = vst.msk [vmem:[%s262_s8 + $0x4] sm:$0xf] %vm319_vm1, %v323_v15 }
 0x132   : > { %v328_v16 = vpop.permute.xlu0 %327 }
 0x133   : > { %476 = vst.msk [vmem:[%s262_s8 + $0x8] sm:$0xf] %vm319_vm1, %v328_v16 }
 0x134 PF: > { %s17_s17 = sadd.s32 1, %s710_s17   ;;  %s865_s12 = smov %s694_s13 }
 0x135   : > { %p14_p1 = scmp.ge.s32.totalorder %s17_s17, 4   ;;  %s866_s13 = smov %s698_s14 }
 0x136   : > { %s867_s14 = smov %s815_s20  ;;  %s868_s15 = smov %s706_s16 }
 0x137   : > { %s869_s16 = smov %s871_s6  ;;  %16 = sbr.rel (!%p14_p1) target bundleno = 5 (0x5), region = 92 }
 0x13c   :  { %364 = vsyncpa [#allocation4], 1 }
 0x13d   :  { %366 = vsyncpa [#allocation4 + $0x1], 1 }
 0x13e   :  { %367 = vsyncpa [#allocation6], 1 }

// kernel: encoder_self_attention.6
= control target key start
LH: loop header
LB: loop body
LE: loop exit
PB: predicated region body
PF: predicated region fallthrough
CT: control target
= control target key end

     0   :  { %8 = vsyncpa [#allocation4], 0  ;;  %s712_s0 = inlined_call_operand.vmem [shape: f32[2,8,32], index: 0, kind: input, shape index: {}]   ;;  %s713_s1 = inlined_call_operand.hbm [shape: bf16[32,32], index: 1, kind: input, shape index: {}]   ;;  %s714_s2 = inlined_call_operand.hbm [shape: f32[1,32], index: 2, kind: input, shape index: {}]   ;;  %s715_s3 = inlined_call_operand.vmem [shape: bf16[2,4,8,8], index: 3, kind: output, shape index: {}]  }
   0x1   :  { %9 = vsyncpa [#allocation6], 0  ;;  %s643_s12 = smov 0   ;;  %s645_s13 = smov 0  }
   0x2   :  { %s647_s14 = smov 0  }
   0x3 LB: > { %s442_s15 = sadd.s32 4294967295, %s613_s14   ;;  %s34_s16 = sadd.s32 1, %s609_s13  ;;  %s613_s14 = sphi %s647_s14, %s15_s14   ;;  %s609_s13 = sphi %s645_s13, %s719_s13   ;;  %s605_s12 = sphi %s643_s12, %s718_s12  }
   0x4   : > { %p36_p0 = scmp.ge.s32.totalorder %s34_s16, 2  ;;  %p444_p1 = scmp.ge.s32.totalorder %s613_s14, 1 }
   0x5   : > { %p144_p2 = scmp.lt.s32.totalorder %s613_s14, 3  ;;  %p668_p4 = scmp.eq.s32.totalorder %s442_s15, 0 }
   0x6   : > { %s721_s16 = smov (%p36_p0, %s34_s16), 0  ;;  %s158_s21 = sshll.u32 %s713_s1, 4  ;;  %s159_s21 = int_to_ptr.hbm [resolvable:$true] %s158_s21 }
   0x7   : > { %p664_p3 = pnand %p444_p1, %p144_p2  ;;  %s615_s22 = smov [#allocation3]  }
   0x8   : > { %s160_s23 = sshll.u32 %s615_s22, 4  ;;  %s173_s26 = sshll.u32 %s714_s2, 4  ;;  %s161_s23 = int_to_ptr.vmem [resolvable:$true] %s160_s23  ;;  %s174_s26 = int_to_ptr.hbm [resolvable:$true] %s173_s26 }
   0x9   : > { %p479_p5 = pneg %p664_p3  ;;  %s616_s27 = smov 64  }
   0xa   : > { %s617_s28 = smov 4   ;;  %s618_s29 = smov [#allocation5]  }
   0xb   : > { %p480_p6 = pnand %p668_p4, %p479_p5  ;;  %s175_s30 = sshll.u32 %s618_s29, 4  ;;  %s176_s30 = int_to_ptr.vmem [resolvable:$true] %s175_s30 }
   0xc   : > { %201 = sbr.rel (%p664_p3) target bundleno = 292 (0x124), region = 32 }
   0xd   : > { %482 = dma.hbm_to_vmem [thread:$0]  (!%p480_p6), %s159_s21, 256, %s161_s23, [#allocation4], %s616_s27, %s616_s27, %s617_s28  }
   0xe   : > { %485 = dma.hbm_to_vmem [thread:$0]  (!%p480_p6), %s174_s26, 16, %s176_s30, [#allocation6]  }
  0x11   : > { %596 = dma.done.wait (%p668_p4), [#allocation4], 256  }
  0x12   : > { %598 = vsyncadd (%p668_p4), [#allocation4], 4294967040 }
  0x13   : > { %600 = dma.done.wait (%p668_p4), [#allocation6], 16  }
  0x14   : > { %602 = vsyncadd (%p668_p4), [#allocation6], 4294967280  ;;  %p239_p7 = scmp.lt.s32.totalorder %s605_s12, 1  ;;  %vm263_vm0 = vcmask 261120   ;;  %v619_v0 = vmov 0.0   ;;  %v470_v1 = vld [vmem:[#allocation3 + $0x8] sm:$0xff] }
  0x15   : > { %264 = vst.msk [vmem:[#allocation2] sm:$0xff] %vm263_vm0, %v619_v0  ;;  %294 = vmatpush.bf16.msra.mxu0 %v470_v1  ;;  %v469_v2 = vld [vmem:[#allocation3] sm:$0xff]  ;;  %v522_v8 = vld [vmem:[#allocation5] ss:$0 sm:$0xff]  ;;  %vm313_vm1 = vcmask 60416   ;;  %s620_s15 = smov 104  }
  0x16   : > { %s723_s12 = smov (!%p239_p7, %s605_s12), 1  ;;  %s621_s17 = smov 120  }
  0x17   : > { %s451_s4 = sshll.u32 %s723_s12, 3  ;;  %s468_s8 = sshll.u32 %s723_s12, 4 }
  0x18   : > { %s248_s7 = scalar_lea.vmem %s712_s0, %s451_s4  ;;  %s257_s11 = scalar_lea.vmem %s715_s3, %s468_s8 }
  0x19   : > { %v265_v3 = vld [vmem:[%s248_s7] sm:$0xff]  ;;  %295 = vmatpush.bf16.msra.mxu0 %v469_v2  ;;  %s622_s18 = smov 112  }
  0x1a   : > { %v266_v4 = vpack.c.bf16 %v265_v3, %v265_v3 }
  0x1c   : > { %462 = vmatmul.msk.bf16.vlgmr.msra.gmra.mxu0 %vm263_vm0, %v266_v4  ;;  %v267_v5 = vld [vmem:[#allocation2] sm:$0xff] }
  0x99   : > { %v297_v6 = vpop.f32.mrf.mxu0 }
  0x9a   : > { %v301_v7 = vadd.f32 %v297_v6, %v267_v5 }
  0x9c   : > { %302 = vst.msk [vmem:[#allocation2] sm:$0xff] %vm263_vm0, %v301_v7 }
  0xa1   : > { %v299_v9 = vpop.f32.mrf.mxu0 }
  0xa3   : > { %v306_v10 = vld [vmem:[#allocation2] sm:$0xff] }
  0xa4   : > { %v311_v11 = vadd.f32 %v522_v8, %v306_v10 }
  0xa6   : > { %v312_v12 = vpack.c.bf16 %v311_v11, %v311_v11 }
  0xa8   : > { %326 = vrot.lane.b32.xlu1 %v312_v12, %s620_s15  ;;  %316 = vrot.lane.b32.xlu0 %v312_v12, %s621_s17  ;;  %314 = vst.msk [vmem:[%s257_s11] sm:$0xf] %vm313_vm1, %v312_v12 }
  0xb0   : > { %321 = vrot.lane.b32.xlu0 %v312_v12, %s622_s18 }
 0x11a   : > { %v327_v13 = vpop.permute.xlu1 %326  ;;  %v317_v14 = vpop.permute.xlu0 %316 }
 0x11b   : > { %465 = vst.msk [vmem:[%s257_s11 + $0xc] sm:$0xf] %vm313_vm1, %v327_v13 }
 0x11c   : > { %463 = vst.msk [vmem:[%s257_s11 + $0x4] sm:$0xf] %vm313_vm1, %v317_v14 }
 0x122   : > { %v322_v15 = vpop.permute.xlu0 %321 }
 0x123   : > { %464 = vst.msk [vmem:[%s257_s11 + $0x8] sm:$0xf] %vm313_vm1, %v322_v15 }
 0x124 PF: > { %s15_s14 = sadd.s32 1, %s613_s14   ;;  %s718_s12 = smov %s609_s13 }
 0x125   : > { %p12_p8 = scmp.ge.s32.totalorder %s15_s14, 4   ;;  %s719_s13 = smov %s721_s16 }
 0x127   :  { %14 = sbr.rel (!%p12_p8) target bundleno = 3 (0x3), region = 83 }
 0x12c   :  { %358 = vsyncpa [#allocation4], 1 }
 0x12d   :  { %360 = vsyncpa [#allocation4 + $0x1], 1 }
 0x12e   :  { %361 = vsyncpa [#allocation6], 1 }

// kernel: encoder_self_attention.7
= control target key start
LH: loop header
LB: loop body
LE: loop exit
PB: predicated region body
PF: predicated region fallthrough
CT: control target
= control target key end

     0   :  { %s712_s12 = smov 0   ;;  %s714_s13 = smov 0   ;;  %s790_s0 = inlined_call_operand.vmem [shape: bf16[2,4,8,8], index: 0, kind: input, shape index: {}]   ;;  %s791_s1 = inlined_call_operand.vmem [shape: bf16[2,4,8,8], index: 1, kind: input, shape index: {}]   ;;  %s792_s2 = inlined_call_operand.vmem [shape: bf16[2,4,8,8], index: 2, kind: input, shape index: {}]   ;;  %s793_s3 = inlined_call_operand.vmem [shape: f32[2,4,8,8], index: 3, kind: output, shape index: {}]  }
   0x1   :  { %s716_s14 = smov 0   ;;  %s718_s15 = smov 0  }
   0x2   :  { %s720_s16 = smov 0  }
   0x3 LB: > { %s35_s17 = sadd.s32 1, %s679_s14  ;;  %s39_s18 = sadd.s32 1, %s683_s15  ;;  %s687_s16 = sphi %s720_s16, %s13_s16   ;;  %s683_s15 = sphi %s718_s15, %s797_s15   ;;  %s679_s14 = sphi %s716_s14, %s796_s14   ;;  %s675_s13 = sphi %s714_s13, %s795_s13   ;;  %s671_s12 = sphi %s712_s12, %s794_s12  }
   0x4   : > { %p37_p0 = scmp.ge.s32.totalorder %s35_s17, 4  ;;  %p584_p1 = scmp.ge.s32.totalorder %s687_s16, 1 }
   0x5   : > { %p217_p2 = scmp.lt.s32.totalorder %s687_s16, 9 }
   0x6   : > { %s799_s17 = smov (%p37_p0, %s35_s17), 0  ;;  %s801_s18 = smov (!%p37_p0, %s39_s18), %s683_s15 }
   0x7   : > { %p218_p3 = pnand %p584_p1, %p217_p2  ;;  %p41_p4 = scmp.ge.s32.totalorder %s801_s18, 2 }
   0x8   : > { %p275_p5 = scmp.lt.s32.totalorder (!%p218_p3), %s675_s13, 1  ;;  %p277_p6 = scmp.lt.s32.totalorder (!%p218_p3), %s671_s12, 3 }
   0x9   : > { %s803_s18 = smov (%p41_p4, %s801_s18), 0  ;;  %221 = sbr.rel (%p218_p3) target bundleno = 661 (0x295), region = 32 }
   0xe   : > { %vm327_vm0 = vcmask 64512   ;;  %v689_v0 = vmov 0.0   ;;  %s805_s13 = smov (!%p275_p5, %s675_s13), 1  ;;  %s807_s12 = smov (!%p277_p6, %s671_s12), 3  ;;  %vm324_vm1 = vcmask 7168   ;;  %v690_v4 = vmov -inf  }
   0xf   : > { %328 = vst.msk [vmem:[#allocation4] sm:$0xff] %vm327_vm0, %v689_v0  ;;  %s585_s19 = sshll.u32 %s805_s13, 2  ;;  %v691_v8 = vmov 0   ;;  %vm387_vm2 = vcmask 1043456  }
  0x10   : > { %s743_s20 = sadd.s32 %s585_s19, %s807_s12  ;;  %325 = vst.msk [vmem:[#allocation2] sm:$0xff] %vm324_vm1, %v690_v4  ;;  %640 = vset.pattern.permute.xlu0 %v691_v8  ;;  %642 = vset.pattern.permute.xlu2 %v691_v8 }
  0x11   : > { %s746_s21 = sshll.u32 %s743_s20, 2  ;;  %326 = vst.msk [vmem:[#allocation3] sm:$0xff] %vm324_vm1, %v689_v0  ;;  %641 = vset.pattern.permute.xlu1 %v691_v8  ;;  %s592_s4 = sshll.u32 %s743_s20, 3 }
  0x12   : > { %s296_s24 = scalar_lea.vmem %s791_s1, %s746_s21  ;;  %s285_s27 = scalar_lea.vmem %s790_s0, %s746_s21 }
  0x13   : > { %v330_v1 = vld [vmem:[%s296_s24] sm:$0xf]  ;;  %s307_s30 = scalar_lea.vmem %s792_s2, %s746_s21  ;;  %s318_s7 = scalar_lea.vmem %s793_s3, %s592_s4 }
  0x14   : > { %v336_v2 = vsel %vm327_vm0, %v330_v1, 0  ;;  %v329_v3 = vld [vmem:[%s285_s27] sm:$0xf] }
  0x15   : > { %345 = vmatpush.bf16.xpose.msra.mxu0 %v336_v2  ;;  %v383_v15 = vld [vmem:[%s307_s30] sm:$0xf] }
  0x16   : > { %v389_v16 = vsel %vm387_vm2, %v383_v15, 0  ;;  %v375_v27 = vld [vmem:[#allocation4] sm:$0xff] }
  0x17   : > { %v351_v9 = vld [vmem:[#allocation2] sm:$0xff]  ;;  %398 = vmatpush.bf16.msra.mxu1 %v389_v16 }
  0x18   : > { %v367_v23 = vld [vmem:[#allocation3] sm:$0xff] }
  0x1c   : > { %593 = vmatmul.msk.bf16.vlgmr.msra.gmra.mxu0 %vm327_vm0, %v329_v3 }
  0x99   : > { %v347_v5 = vpop.f32.mrf.mxu0 }
  0x9a   : > { %v352_v6 = vsel %vm327_vm0, %v347_v5, -inf }
  0x9b   : > { %353 = vmax.xlane.f32.xlu0 %v352_v6 }
  0xa1   : > { %v349_v7 = vpop.f32.mrf.mxu0 }
 0x10e   : > { %v354_v10 = vpop.xlane.xlu0 %353 }
 0x10f   : > { %v355_v11 = vmax.f32 %v351_v9, %v354_v10 }
 0x111   : > { %v356_v12 = vsub.f32 %v351_v9, %v355_v11  ;;  %406 = vst.msk [vmem:[#allocation2] sm:$0xff] %vm324_vm1, %v355_v11  ;;  %361 = vperm.xlu0 %640, %v355_v11  }
 0x113   : > { %v357_v13 = vmul.f32 1.442695, %v356_v12 }
 0x115   : > { %643 = vpow2.f32 %v357_v13 }
 0x11b   : > { %v644_v14 = vpop.eup %643 }
 0x11c   : > { %378 = vperm.xlu2 %642, %v644_v14   ;;  %v368_v24 = vmul.f32 %v644_v14, %v367_v23 }
 0x176   : > { %v379_v28 = vpop.permute.xlu2 %378 }
 0x177   : > { %v381_v29 = vmul.f32 %v379_v28, %v375_v27 }
 0x183   : > { %v362_v17 = vpop.permute.xlu0 %361 }
 0x184   : > { %v364_v18 = vsub.f32 %v347_v5, %v362_v17 }
 0x186   : > { %v365_v19 = vmul.f32 1.442695, %v364_v18 }
 0x188   : > { %645 = vpow2.f32 %v365_v19 }
 0x18e   : > { %v646_v20 = vpop.eup %645 }
 0x18f   : > { %v369_v21 = vsel %vm327_vm0, %v646_v20, 0.0  ;;  %v382_v22 = vpack.c.bf16 %v646_v20, %v646_v20 }
 0x190   : > { %370 = vadd.xlane.f32.xlu1 %v369_v21 }
 0x191   : > { %594 = vmatmul.msk.bf16.vlgmr.msra.gmra.mxu1 %vm327_vm0, %v382_v22 }
 0x203   : > { %v371_v25 = vpop.xlane.xlu1 %370 }
 0x204   : > { %v372_v26 = vadd.f32 %v371_v25, %v368_v24 }
 0x206   : > { %374 = vst.msk [vmem:[#allocation3] sm:$0xff] %vm324_vm1, %v372_v26 }
 0x20d   : > { %v411_v30 = vld [vmem:[#allocation3] sm:$0xff] }
 0x20e   : > { %v400_v31 = vpop.f32.mrf.mxu1  ;;  %414 = vperm.xlu1 %641, %v411_v30  }
 0x20f   : > { %v404_v32 = vadd.f32 %v400_v31, %v381_v29 }
 0x211   : > { %405 = vst.msk [vmem:[#allocation4] sm:$0xff] %vm327_vm0, %v404_v32 }
 0x216   : > { %v402_v33 = vpop.f32.mrf.mxu1 }
 0x218   : > { %v410_v44 = vld [vmem:[#allocation4] sm:$0xff] }
 0x280   : > { %v415_v34 = vpop.permute.xlu1 %414 }
 0x281   : > { %647 = vrcp.f32 %v415_v34  ;;  %v428_v38 = vand.u32 2147483648, %v415_v34  ;;  %v426_v40 = vand.u32 2147483647, %v415_v34  ;;  %vm422_vm4 = vweird.f32 %v415_v34 }
 0x283   : > { %v429_v42 = vor.u32 1.1754944e-38, %v428_v38  ;;  %vm427_vm6 = vcmp.eq.f32.partialorder %v426_v40, 8.507059e+37 }
 0x287   : > { %v648_v35 = vpop.eup %647 }
 0x288   : > { %v418_v36 = vmul.f32 %v648_v35, %v415_v34  ;;  %vm423_vm3 = vweird.f32 %v648_v35 }
 0x289   : > { %vm424_vm5 = vmor %vm422_vm4, %vm423_vm3 }
 0x28a   : > { %v419_v37 = vsub.f32 1.0, %v418_v36 }
 0x28c   : > { %v420_v39 = vmul.f32 %v648_v35, %v419_v37 }
 0x28e   : > { %v421_v41 = vadd.f32 %v648_v35, %v420_v39 }
 0x290   : > { %v425_v43 = vsel %vm424_vm5, %v648_v35, %v421_v41 }
 0x291   : > { %v430_v45 = vsel %vm427_vm6, %v429_v42, %v425_v43 }
 0x292   : > { %v431_v46 = vmul.f32 %v430_v45, %v410_v44 }
 0x294   : > { %432 = vst.msk [vmem:[%s318_s7] sm:$0xff] %vm327_vm0, %v431_v46 }
 0x295 PF: > { %s13_s16 = sadd.s32 1, %s687_s16   ;;  %s794_s12 = smov %s679_s14 }
 0x296   : > { %p10_p7 = scmp.ge.s32.totalorder %s13_s16, 10   ;;  %s795_s13 = smov %s683_s15 }
 0x297   : > { %s796_s14 = smov %s799_s17  ;;  %s797_s15 = smov %s803_s18 }
 0x298   :  { %12 = sbr.rel (!%p10_p7) target bundleno = 3 (0x3), region = 76 }

</bundles_post_ra>
